<compile_context>
chip_gen: v7x
topology: tpu7x:2x2x1
jax: 0.10.0
libtpu: 0.0.40
codegen_flags: <defaults>
</compile_context>

<pallas_src>
import jax
import jax.numpy as jnp
from jax.experimental import pallas as pl
from jax.experimental.pallas import tpu as pltpu


def mlp_kernel(x_ref, w1_ref, b1_ref, w2_ref, b2_ref, o_ref):
    # Linear(256,128) + ReLU: MXU matmul with f32 accumulation; bias + ReLU kept
    # in f32 on the VPU (v5e's VPU has no bf16 ALU).
    h = jnp.dot(x_ref[...], w1_ref[...], preferred_element_type=jnp.float32)
    h = jnp.maximum(h + b1_ref[...], 0.0)            # (tile, 128) + (1, 128)
    # Linear(128,32) + ReLU.  Cast h to the weight dtype so the bf16 path feeds
    # the MXU at its native rate; a no-op in the f32 path.
    y = jnp.dot(h.astype(w2_ref.dtype), w2_ref[...],
                preferred_element_type=jnp.float32)
    y = jnp.maximum(y + b2_ref[...], 0.0)            # (tile, 32) + (1, 32)
    o_ref[...] = y.astype(o_ref.dtype)


def _round_up(v, m):
    return ((v + m - 1) // m) * m


def node_feature_encoder(x, w1, b1, w2, b2, *, tile_n=2048,
                         compute_dtype=jnp.bfloat16, vmem_limit_bytes=None):
    """x: [N, 256] -> [N, 32] float32.

    tile_n: rows per grid step (multiple of 128).  Sweep 1024/2048/4096 per chip;
            bigger tiles help most on v7x (higher per-TC HBM BW) and on the bf16
            path on v6e.  On v7x keep vmem_limit_bytes <= ~48-56 MiB (64 MiB
            physical VMEM per TC); on v5e/v6e the ceiling is higher (128 MiB).
    compute_dtype: dtype of the x/W1/W2 read streams (default bf16 — halves the
            dominant HBM read).  Accumulation, bias adds, ReLU and the output are
            always float32.  Pass jnp.float32 for bit-exact f32 results; note the
            bf16 default quantizes inputs/weights (~1e-2 relative error).
    """
    N, D_in = x.shape
    H, D_out = w1.shape[1], w2.shape[1]
    assert D_in == 256 and w1.shape == (256, 128) and w2.shape == (128, 32)
    assert tile_n % 128 == 0, "tile_n must be a multiple of 128 (MXU/vreg aligned)"

    if compute_dtype is not None:
        if x.dtype != compute_dtype:
            x = x.astype(compute_dtype)
        w1 = w1.astype(compute_dtype)
        w2 = w2.astype(compute_dtype)
    b1 = b1.reshape(1, H).astype(jnp.float32)        # biases stay f32
    b2 = b2.reshape(1, D_out).astype(jnp.float32)

    # Pick the effective tile:
    #  - never allocate a tile (and its double buffer) much larger than N,
    #  - if everything would land in a single tile but N spans > 128 rows, split
    #    into two tiles so both TensorCores on megacore parts (v7x) get work.
    tile = min(tile_n, max(128, _round_up(N, 128)))
    if pl.cdiv(N, tile) == 1 and N > 128:
        tile = max(128, _round_up(pl.cdiv(N, 2), 128))
    n_tiles = pl.cdiv(N, tile)

    # No wrapper-side padding: the cdiv grid lets Pallas clamp the tail block.
    # The unread tail region of the last x tile holds unspecified VMEM data;
    # rows are independent and the partial output block never writes those rows
    # back, so the garbage cannot reach valid outputs.
    flops = 2 * N * (D_in * H + H * D_out)
    bytes_accessed = (N * D_in * x.dtype.itemsize                 # x read
                      + N * D_out * 4                             # y write
                      + (D_in * H + H * D_out) * w1.dtype.itemsize
                      + (H + D_out) * 4)                          # biases

    out = pl.pallas_call(
        mlp_kernel,
        out_shape=jax.ShapeDtypeStruct((N, D_out), jnp.float32),
        grid_spec=pltpu.PrefetchScalarGridSpec(
            num_scalar_prefetch=0,
            grid=(n_tiles,),
            in_specs=[
                pl.BlockSpec((tile, D_in), lambda i: (i, 0)),   # x tile (streamed)
                pl.BlockSpec((D_in, H),    lambda i: (0, 0)),   # W1 (resident)
                pl.BlockSpec((1, H),       lambda i: (0, 0)),   # b1 (resident)
                pl.BlockSpec((H, D_out),   lambda i: (0, 0)),   # W2 (resident)
                pl.BlockSpec((1, D_out),   lambda i: (0, 0)),   # b2 (resident)
            ],
            out_specs=pl.BlockSpec((tile, D_out), lambda i: (i, 0)),
        ),
        compiler_params=pltpu.CompilerParams(
            dimension_semantics=("parallel",),
            vmem_limit_bytes=vmem_limit_bytes,
        ),
        cost_estimate=pl.CostEstimate(flops=flops, transcendentals=0,
                                      bytes_accessed=bytes_accessed),
    )(x, w1, b1, w2, b2)

    return out


def init_params(key):
    """Deterministic init mimicking PyTorch nn.Linear default (uniform +-1/sqrt(fan_in))."""
    k1, k2, k3, k4 = jax.random.split(key, 4)
    bound1 = 1.0 / jnp.sqrt(256.0)
    bound2 = 1.0 / jnp.sqrt(128.0)
    w1 = jax.random.uniform(k1, (256, 128), jnp.float32, -bound1, bound1)
    b1 = jax.random.uniform(k2, (1, 128), jnp.float32, -bound1, bound1)
    w2 = jax.random.uniform(k3, (128, 32), jnp.float32, -bound2, bound2)
    b2 = jax.random.uniform(k4, (1, 32), jnp.float32, -bound2, bound2)
    return w1, b1, w2, b2


if __name__ == "__main__":
    key = jax.random.PRNGKey(0)
    kx, kp = jax.random.split(key)

    N = 300  # deliberately NOT a multiple of the tile size (exercises the
             # partial-last-block path — no wrapper pad / slice any more)
    x = jax.random.normal(kx, (N, 256), dtype=jnp.float32)
    w1, b1, w2, b2 = init_params(kp)

    # Reference in plain JAX (f32).
    ref = jnp.maximum(jnp.maximum(x @ w1 + b1, 0.0) @ w2 + b2, 0.0)

    # Exact f32 path, small tile so the demo runs a multi-step grid (grid = 2,
    # last block partial: 256 + 44 rows).
    out_f32 = node_feature_encoder(x, w1, b1, w2, b2, tile_n=256,
                                   compute_dtype=jnp.float32)
    out_f32 = jax.block_until_ready(out_f32)
    assert out_f32.shape == (N, 32)
    assert jnp.allclose(out_f32, ref, atol=1e-5, rtol=1e-5)

    # Default path: bf16 read streams, auto tile split (2 tiles for N=300),
    # f32 accumulation / bias / ReLU / output.  Looser tolerance from the bf16
    # quantization of x/W1/W2.
    out_def = node_feature_encoder(x, w1, b1, w2, b2)
    out_def = jax.block_until_ready(out_def)
    assert out_def.shape == (N, 32)
    assert jnp.allclose(out_def, ref, atol=1e-1, rtol=1e-1)

    print("KERNEL_OK")
</pallas_src>

<mosaic_0001>
module attributes {stable_mosaic.version = 11 : i64} {
  func.func @mlp_kernel(%arg0: i32, %arg1: memref<256x256xf32, #tpu.memory_space<vmem>>, %arg2: memref<256x128xf32, #tpu.memory_space<vmem>>, %arg3: memref<1x128xf32, #tpu.memory_space<vmem>>, %arg4: memref<128x32xf32, #tpu.memory_space<vmem>>, %arg5: memref<1x32xf32, #tpu.memory_space<vmem>>, %arg6: memref<256x32xf32, #tpu.memory_space<vmem>>) attributes {dimension_semantics = [#tpu.dimension_semantics<parallel>], iteration_bounds = array<i64: 2>, scalar_prefetch = 0 : i64, scratch_operands = 0 : i64, tpu.core_type = #tpu.core_type<tc>, window_params = [{transform_indices = @transform_0, window_bounds = array<i64: 256, 256>}, {pipeline_mode = #tpu.pipeline_mode<synchronous>, transform_indices = @transform_1, window_bounds = array<i64: 256, 128>}, {pipeline_mode = #tpu.pipeline_mode<synchronous>, transform_indices = @transform_2, window_bounds = array<i64: 1, 128>}, {pipeline_mode = #tpu.pipeline_mode<synchronous>, transform_indices = @transform_3, window_bounds = array<i64: 128, 32>}, {pipeline_mode = #tpu.pipeline_mode<synchronous>, transform_indices = @transform_4, window_bounds = array<i64: 1, 32>}, {transform_indices = @transform_5, window_bounds = array<i64: 256, 32>}]} {
    %c0 = arith.constant 0 : index
    %c0_0 = arith.constant 0 : index
    %0 = vector.load %arg1[%c0, %c0_0] : memref<256x256xf32, #tpu.memory_space<vmem>>, vector<256x256xf32>
    %c0_1 = arith.constant 0 : index
    %c0_2 = arith.constant 0 : index
    %1 = vector.load %arg2[%c0_1, %c0_2] : memref<256x128xf32, #tpu.memory_space<vmem>>, vector<256x128xf32>
    %cst = arith.constant dense<0.000000e+00> : vector<256x128xf32>
    %2 = tpu.matmul %0, %1, %cst {dimension_numbers = #tpu.dot_dimension_numbers<[1], [0], [0], [1], [0, 0, 1, 1], [], []>} : vector<256x256xf32>, vector<256x128xf32>, vector<256x128xf32> -> vector<256x128xf32>
    %c0_3 = arith.constant 0 : index
    %c0_4 = arith.constant 0 : index
    %3 = vector.load %arg3[%c0_3, %c0_4] : memref<1x128xf32, #tpu.memory_space<vmem>>, vector<1x128xf32>
    %4 = vector.broadcast %3 : vector<1x128xf32> to vector<256x128xf32>
    %5 = arith.addf %2, %4 : vector<256x128xf32>
    %cst_5 = arith.constant 0.000000e+00 : f32
    %6 = vector.broadcast %cst_5 : f32 to vector<256x128xf32>
    %7 = arith.maximumf %5, %6 : vector<256x128xf32>
    %c0_6 = arith.constant 0 : index
    %c0_7 = arith.constant 0 : index
    %8 = vector.load %arg4[%c0_6, %c0_7] : memref<128x32xf32, #tpu.memory_space<vmem>>, vector<128x32xf32>
    %cst_8 = arith.constant dense<0.000000e+00> : vector<256x32xf32>
    %9 = tpu.matmul %7, %8, %cst_8 {dimension_numbers = #tpu.dot_dimension_numbers<[1], [0], [0], [1], [0, 0, 1, 1], [], []>} : vector<256x128xf32>, vector<128x32xf32>, vector<256x32xf32> -> vector<256x32xf32>
    %c0_9 = arith.constant 0 : index
    %c0_10 = arith.constant 0 : index
    %10 = vector.load %arg5[%c0_9, %c0_10] : memref<1x32xf32, #tpu.memory_space<vmem>>, vector<1x32xf32>
    %11 = vector.broadcast %10 : vector<1x32xf32> to vector<256x32xf32>
    %12 = arith.addf %9, %11 : vector<256x32xf32>
    %cst_11 = arith.constant 0.000000e+00 : f32
    %13 = vector.broadcast %cst_11 : f32 to vector<256x32xf32>
    %14 = arith.maximumf %12, %13 : vector<256x32xf32>
    %c0_12 = arith.constant 0 : index
    %c0_13 = arith.constant 0 : index
    %15 = vector.load %arg6[%c0_12, %c0_13] : memref<256x32xf32, #tpu.memory_space<vmem>>, vector<256x32xf32>
    tpu.vector_store %arg6[%c0_12, %c0_13], %14 {strides = array<i32>} : memref<256x32xf32, #tpu.memory_space<vmem>>, vector<256x32xf32>,
    return
  }
  func.func @transform_0(%arg0: i32) -> (i32, i32) {
    %c0_i32 = arith.constant 0 : i32
    %c0_i32_0 = arith.constant 0 : i32
    return %arg0, %c0_i32 : i32, i32
  }
  func.func @transform_1(%arg0: i32) -> (i32, i32) {
    %c0_i32 = arith.constant 0 : i32
    %c0_i32_0 = arith.constant 0 : i32
    %c0_i32_1 = arith.constant 0 : i32
    return %c0_i32, %c0_i32_0 : i32, i32
  }
  func.func @transform_2(%arg0: i32) -> (i32, i32) {
    %c0_i32 = arith.constant 0 : i32
    %c0_i32_0 = arith.constant 0 : i32
    %c0_i32_1 = arith.constant 0 : i32
    return %c0_i32, %c0_i32_0 : i32, i32
  }
  func.func @transform_3(%arg0: i32) -> (i32, i32) {
    %c0_i32 = arith.constant 0 : i32
    %c0_i32_0 = arith.constant 0 : i32
    %c0_i32_1 = arith.constant 0 : i32
    return %c0_i32, %c0_i32_0 : i32, i32
  }
  func.func @transform_4(%arg0: i32) -> (i32, i32) {
    %c0_i32 = arith.constant 0 : i32
    %c0_i32_0 = arith.constant 0 : i32
    %c0_i32_1 = arith.constant 0 : i32
    return %c0_i32, %c0_i32_0 : i32, i32
  }
  func.func @transform_5(%arg0: i32) -> (i32, i32) {
    %c0_i32 = arith.constant 0 : i32
    %c0_i32_0 = arith.constant 0 : i32
    return %arg0, %c0_i32 : i32, i32
  }
}

</mosaic_0001>

<bundles_post_ra>
// kernel: tpu_custom_call.1
= control target key start
LH: loop header
LB: loop body
LE: loop exit
PB: predicated region body
PF: predicated region fallthrough
CT: control target
= control target key end

     0   :  { %10 = vsyncpa [#allocation3], 0  ;;  %s2491_s0 = inlined_call_operand.hbm [shape: f32[300,256], index: 0, kind: input, shape index: {}]   ;;  %s2492_s1 = inlined_call_operand.hbm [shape: f32[256,128], index: 1, kind: input, shape index: {}]   ;;  %s2493_s2 = inlined_call_operand.vmem [shape: f32[1,128], index: 2, kind: input, shape index: {}]   ;;  %s2494_s3 = inlined_call_operand.vmem [shape: f32[128,32], index: 3, kind: input, shape index: {}]   ;;  %s2495_s4 = inlined_call_operand.vmem [shape: f32[1,32], index: 4, kind: input, shape index: {}]   ;;  %s2496_s5 = inlined_call_operand.vmem [shape: f32[300,32], index: 5, kind: output, shape index: {}]  }
   0x1   :  { %12 = vsyncpa [#allocation3 + $0x1], 0 }
   0x2   :  { %13 = vsyncpa [#allocation5], 0  ;;  %s1898_s18 = smov 0   ;;  %s1900_s19 = smov 0  }
   0x3   :  { %s1902_s20 = smov 0   ;;  %s1904_s21 = smov 0  }
   0x4 LB: > { %s1917_s22 = sadd.s32 4294967295, %s1827_s21   ;;  %s1920_s23 = sadd.s32 1, %s1827_s21   ;;  %s1827_s21 = sphi %s1904_s21, %s2519_s21   ;;  %s1823_s20 = sphi %s1902_s20, %s2518_s20   ;;  %s1819_s19 = sphi %s1900_s19, %s2517_s19   ;;  %s1815_s18 = sphi %s1898_s18, %s2516_s18  }
   0x5   : > { %s23_s24 = ssub.s32 %s1827_s21, %s1920_s23  ;;  %s26_s25 = sadd.s32 1, %s1823_s20 }
   0x6   : > { %p24_p0 = scmp.eq.s32.totalorder %s23_s24, 0  ;;  %p33_p1 = scmp.ne.s32.totalorder %s1823_s20, %s1819_s19 }
   0x7   : > { %p34_p2 = scmp.eq.s32.totalorder %s1827_s21, 0  ;;  %p39_p3 = scmp.ne.s32.totalorder %s1819_s19, %s1815_s18 }
   0x8   : > { %s1930_s26 = scalar_select %p24_p0, %s1823_s20, %s26_s25  }
   0x9   : > { %p1932_p4 = por %p34_p2, %p33_p1  ;;  %p2497_p5 = scmp.eq.s32.totalorder %s1917_s22, 0 }
   0xa   : > { %p147_p6 = scmp.eq.s32.totalorder %s1917_s22, 1  ;;  %p1307_p7 = scmp.ge.s32.totalorder %s1827_s21, 1 }
   0xb   : > { %s2500_s27 = scalar_select %p1932_p4, 1, 0 }
   0xc   : > { %p1941_p8 = por %p2497_p5, %p39_p3  ;;  %p160_p9 = scmp.lt.s32.totalorder %s1827_s21, 3 }
   0xd   : > { %p1946_p10 = por %p147_p6, %p33_p1  ;;  %s1861_s6 = smov [#allocation4]  }
   0xe   : > { %s2501_s28 = scalar_select %p1941_p8, 1, 0 }
   0xf   : > { %s2502_s29 = scalar_select %p1946_p10, 1, 0 }
  0x10   : > { %p1950_p11 = pnand %p1307_p7, %p160_p9  ;;  %s172_s7 = sshll.u32 %s1861_s6, 4  ;;  %s173_s7 = int_to_ptr.vmem [resolvable:$true] %s172_s7 }
  0x11   : > { %s1701_s11 = scalar_lea.hbm %s2492_s1, 4096 }
  0x12   : > { %s2503_s30 = scalar_select %p1950_p11, 1, 0 }
  0x13   : > { %p1593_p12 = pneg %p1950_p11  ;;  %p1702_p0 = scmp.ne.s32.totalorder %s2492_s1, %s1701_s11 }
  0x14   : > { %p1708_p6 = scmp.lt.u32.totalorder %s1701_s11, %s2492_s1 }
  0x15   : > { %p1958_p13 = pnand %p1593_p12, %p2497_p5 }
  0x17   : > { %p1703_p1 = pneg %p1958_p13 }
  0x19   : > { %p1704_p2 = pnand %p1703_p1, %p1702_p0 }
  0x1b   : > { %p1705_p3 = pneg %p1704_p2 }
  0x1d   : > { %p1710_p7 = pnand %p1708_p6, %p1705_p3 }
  0x1f   : > { %1713 = shalt.err (!%p1710_p7)
}
  0x20   : > { %s1714_s16 = scalar_lea.vmem %s173_s7, 4096  ;;  %p1722_p10 = scmp.lt.s32.totalorder %s173_s7, %s173_s7 }
  0x21   : > { %p1715_p9 = scmp.ne.s32.totalorder %s173_s7, %s1714_s16  ;;  %p1723_p8 = scmp.lt.s32.totalorder %s1714_s16, %s1714_s16 }
  0x23   : > { %p1717_p12 = pnand %p1715_p9, %p1703_p1  ;;  %p1724_p11 = por %p1723_p8, %p1722_p10 }
  0x25   : > { %p1718_p5 = pneg %p1717_p12 }
  0x27   : > { %p1725_p4 = pnand %p1724_p11, %p1718_p5 }
  0x29   : > { %1728 = shalt.err (!%p1725_p4)
}
  0x2a   : > { %s1862_s17 = smov 128   ;;  %s1863_s18 = smov 8  }
  0x2b   : > { %1596 = dma.hbm_to_vmem [thread:$0]  (!%p1958_p13), %s2492_s1, 4096, %s173_s7, [#allocation5], %s1862_s17, %s1862_s17, %s1863_s18  }
  0x2c   : > { %p1309_p0 = scmp.ge.s32.totalorder %s1827_s21, 2 }
  0x2d   : > { %p2505_p2 = scmp.ne.s32.totalorder (!%p1309_p0), %s2500_s27, 0 }
  0x2e   : > { %191 = sbr.rel (%p1309_p0) target bundleno = 88 (0x58), region = 32 }
  0x35   : > { %194 = sbr.rel (!%p2505_p2) target bundleno = 88 (0x58), region = 36  ;;  %s195_s6 = sand.u32 (%p2505_p2), 1, %s1823_s20  }
  0x36   : > { %s1311_s9 = sshll.u32 (%p2505_p2), %s1827_s21, 5  ;;  %s1310_s10 = sshll.u32 (%p2505_p2), %s195_s6, 9 }
  0x37   : > { %s201_s11 = ssub.s32 (%p2505_p2), 38, %s1311_s9  ;;  %s1986_s13 = scalar_lea.sflag (%p2505_p2), [#allocation3], %s195_s6 }
  0x38   : > { %p202_p4 = scmp.lt.s32.totalorder (%p2505_p2), %s201_s11, 32  ;;  %s199_s7 = scalar_lea.vmem (%p2505_p2), [#allocation2], %s1310_s10 }
  0x3c   : > { %s2521_s11 = smov (!%p202_p4, %s201_s11), 32 }
  0x3d   : > { %s1983_s12 = sshll.u32 %s2521_s11, 8 }
  0x3e   : > { %s207_s8 = ssub.s32 8192, %s1983_s12 }
  0x3f   : > { %208 = vsyncadd %s1986_s13, %s207_s8  ;;  %p1314_p5 = scmp.ne.s32.totalorder %s1983_s12, 0  ;;  %s1344_s27 = sshll.u32 %s1827_s21, 13 }
  0x40   : > { %s1994_s16 = scalar_lea.hbm %s2491_s0, %s1344_s27  ;;  %s214_s17 = sshll.u32 %s199_s7, 4  ;;  %s1996_s17 = int_to_ptr.vmem [resolvable:$true] %s214_s17 }
  0x41   : > { %s1729_s18 = scalar_lea.hbm %s1994_s16, %s1983_s12  ;;  %s1733_s21 = scalar_lea.hbm %s2491_s0, 9728 }
  0x42   : > { %p1730_p8 = scmp.ne.s32.totalorder %s1994_s16, %s1729_s18  ;;  %p1734_p13 = scmp.lt.u32.totalorder %s1994_s16, %s2491_s0 }
  0x43   : > { %p1735_p1 = scmp.lt.u32.totalorder %s1733_s21, %s1729_s18  ;;  %p1737_p6 = scmp.lt.u32.totalorder %s1729_s18, %s1994_s16 }
  0x44   : > { %p1731_p10 = pnand %p1730_p8, %p1314_p5 }
  0x45   : > { %p1736_p3 = por %p1735_p1, %p1734_p13 }
  0x46   : > { %p1732_p11 = pneg %p1731_p10 }
  0x47   : > { %p1738_p7 = por %p1737_p6, %p1736_p3 }
  0x49   : > { %p1739_p9 = pnand %p1738_p7, %p1732_p11 }
  0x4b   : > { %1742 = shalt.err (!%p1739_p9)
}
  0x4c   : > { %s1743_s10 = scalar_lea.vmem %s1996_s17, %s1983_s12  ;;  %s1864_s11 = smov [#allocation2]  }
  0x4d   : > { %p1744_p12 = scmp.ne.s32.totalorder %s1996_s17, %s1743_s10  ;;  %s1747_s8 = sshll.u32 %s1864_s11, 4  ;;  %s1748_s8 = int_to_ptr.vmem [resolvable:$false] %s1747_s8 }
  0x4e   : > { %s1749_s7 = scalar_lea.vmem %s1748_s8, 16384  ;;  %p1750_p4 = scmp.lt.s32.totalorder %s1996_s17, %s1748_s8 }
  0x4f   : > { %p1745_p0 = pnand %p1744_p12, %p1314_p5  ;;  %p1751_p8 = scmp.lt.s32.totalorder %s1749_s7, %s1743_s10 }
  0x51   : > { %p1746_p2 = pneg %p1745_p0  ;;  %p1752_p10 = por %p1751_p8, %p1750_p4 }
  0x53   : > { %p1753_p13 = pnand %p1752_p10, %p1746_p2 }
  0x55   : > { %1756 = shalt.err (!%p1753_p13)
}
  0x56   : > { %s1865_s27 = smov 256   ;;  %s1866_s14 = smov 16  }
  0x57   : > { %220 = dma.hbm_to_vmem [thread:$0]  (%p1314_p5), %s1994_s16, %s1983_s12, %s1996_s17, %s1986_s13, %s1865_s27, %s1865_s27, %s1866_s14  }
  0x58 PF: > { %p2506_p11 = scmp.ne.s32.totalorder %s2503_s30, 0 }
  0x59   : > { %s2026_s15 = sand.u32 (!%p2506_p11), 1, %s1819_s19   ;;  %p2507_p1 = scmp.ne.s32.totalorder (!%p2506_p11), %s2501_s28, 0 }
  0x5a   : > { %226 = sbr.rel (%p2506_p11) target bundleno = 765 (0x2fd), region = 40  ;;  %s1320_s18 = sshll.u32 (!%p2506_p11), %s2026_s15, 9 }
  0x5b   : > { %s229_s24 = scalar_lea.sflag (!%p2506_p11), [#allocation3], %s2026_s15  ;;  %s2030_s25 = scalar_lea.vmem (!%p2506_p11), [#allocation2], %s1320_s18 }
  0x61   : > { %1806 = dma.done.wait (%p2507_p1), %s229_s24, 8192  }
  0x62   : > { %1808 = vsyncadd (%p2507_p1), %s229_s24, 4294959104  ;;  %p2508_p5 = scmp.eq.s32.totalorder %s1917_s22, 0 }
  0x64   : > { %1810 = dma.done.wait (%p2508_p5), [#allocation5], 4096   ;;  %p2509_p3 = pmov %p2508_p5 }
  0x65   : > { %v1867_v0 = vmov 0.0|0.0   ;;  %v337_v1 = vld [vmem:[#allocation4] sm:$0xff]  ;;  %v338_v2 = vld [vmem:[#allocation4 + $0x8] sm:$0xff]  ;;  %v339_v3 = vld [vmem:[#allocation4 + $0x10] sm:$0xff]  ;;  %s1322_s30 = sshll.u32 %s2026_s15, 8  ;;  %vm913_vm0 = vcmask 261120  }
  0x66   : > { %1812 = vsyncadd (%p2509_p3), [#allocation5], 4294963200  ;;  %1476 = vmatprep.subr.bf16.mxu0 %v1867_v0  ;;  %1556 = vmatprep.subr.bf16.mxu1 %v1867_v0  ;;  %v1477_v4 = vpack.c.bf16 %v338_v2, %v337_v1  ;;  %v340_v5 = vld [vmem:[#allocation4 + $0x18] sm:$0xff]  ;;  %v341_v7 = vld [vmem:[#allocation4 + $0x20] sm:$0xff]  ;;  %s2253_s12 = scalar_lea.vmem [#allocation6], %s1322_s30   ;;  %p2510_p6 = scmp.ne.s32.totalorder %s2502_s29, 0 }
  0x67   : > { %v1480_v6 = vpack.c.bf16 %v340_v5, %v339_v3  ;;  %v342_v8 = vld [vmem:[#allocation4 + $0x28] sm:$0xff]  ;;  %v343_v10 = vld [vmem:[#allocation4 + $0x30] sm:$0xff]  ;;  %v344_v11 = vld [vmem:[#allocation4 + $0x38] sm:$0xff]  ;;  %s1326_s15 = sshll.u32 (%p2510_p6), %s1917_s22, 5  ;;  %s1345_s13 = sshll.u32 (%p2510_p6), %s1917_s22, 8 }
  0x68   : > { %1478 = vmatpush1.bf16.msra.mxu0 %v1477_v4  ;;  %1572 = vmatpush1.bf16.msra.mxu1 %v1477_v4  ;;  %v1483_v9 = vpack.c.bf16 %v342_v8, %v341_v7  ;;  %v274_v12 = vld [vmem:[%s2030_s25 + $0x8] sm:$0xff]  ;;  %v1486_v13 = vpack.c.bf16 %v344_v11, %v343_v10  ;;  %v345_v14 = vld [vmem:[#allocation4 + $0x40] sm:$0xff]  ;;  %v347_v17 = vld [vmem:[#allocation4 + $0x50] sm:$0xff]  ;;  %s954_s16 = ssub.s32 (%p2510_p6), 38, %s1326_s15  ;;  %s2356_s6 = scalar_lea.vmem (%p2510_p6), %s2496_s5, %s1345_s13  }
  0x69   : > { %1479 = vmatprep.subr.bf16.mxu0 %v1867_v0  ;;  %1557 = vmatprep.subr.bf16.mxu1 %v1867_v0  ;;  %v346_v15 = vld [vmem:[#allocation4 + $0x48] sm:$0xff]  ;;  %v348_v18 = vld [vmem:[#allocation4 + $0x58] sm:$0xff]  ;;  %v349_v20 = vld [vmem:[#allocation4 + $0x60] sm:$0xff]  ;;  %p955_p7 = scmp.lt.s32.totalorder (%p2510_p6), %s954_s16, 32 }
  0x6a   : > { %440 = vmatprep.mubr.f32.mxu0 %v274_v12  ;;  %v1489_v16 = vpack.c.bf16 %v346_v15, %v345_v14  ;;  %v1492_v19 = vpack.c.bf16 %v348_v18, %v347_v17  ;;  %v350_v21 = vld [vmem:[#allocation4 + $0x68] sm:$0xff]  ;;  %v351_v23 = vld [vmem:[#allocation4 + $0x70] sm:$0xff]  ;;  %v352_v24 = vld [vmem:[#allocation4 + $0x78] sm:$0xff] }
  0x6b   : > { %v1495_v22 = vpack.c.bf16 %v350_v21, %v349_v20  ;;  %v322_v25 = vld [vmem:[%s2030_s25 + $0x188] sm:$0xff]  ;;  %v1498_v26 = vpack.c.bf16 %v352_v24, %v351_v23  ;;  %v353_v27 = vld [vmem:[#allocation4 + $0x80] sm:$0xff]  ;;  %v355_v30 = vld [vmem:[#allocation4 + $0x90] sm:$0xff] }
  0x6c   : > { %1481 = vmatpush1.bf16.msra.mxu0 %v1480_v6  ;;  %1573 = vmatpush1.bf16.msra.mxu1 %v1480_v6  ;;  %v354_v28 = vld [vmem:[#allocation4 + $0x88] sm:$0xff]  ;;  %v356_v31 = vld [vmem:[#allocation4 + $0x98] sm:$0xff]  ;;  %v357_v33 = vld [vmem:[#allocation4 + $0xa0] sm:$0xff] }
  0x6d   : > { %1482 = vmatprep.subr.bf16.mxu0 %v1867_v0  ;;  %1558 = vmatprep.subr.bf16.mxu1 %v1867_v0  ;;  %v1501_v29 = vpack.c.bf16 %v354_v28, %v353_v27  ;;  %v1504_v32 = vpack.c.bf16 %v356_v31, %v355_v30  ;;  %v358_v34 = vld [vmem:[#allocation4 + $0xa8] sm:$0xff]  ;;  %v359_v36 = vld [vmem:[#allocation4 + $0xb0] sm:$0xff]  ;;  %v360_v37 = vld [vmem:[#allocation4 + $0xb8] sm:$0xff] }
  0x6e   : > { %560 = vmatprep.mubr.f32.mxu1 %v322_v25  ;;  %v1507_v35 = vpack.c.bf16 %v358_v34, %v357_v33  ;;  %v1510_v38 = vpack.c.bf16 %v360_v37, %v359_v36  ;;  %v361_v39 = vld [vmem:[#allocation4 + $0xc0] sm:$0xff]  ;;  %v362_v40 = vld [vmem:[#allocation4 + $0xc8] sm:$0xff]  ;;  %v363_v42 = vld [vmem:[#allocation4 + $0xd0] sm:$0xff] }
  0x6f   : > { %v1513_v41 = vpack.c.bf16 %v362_v40, %v361_v39  ;;  %v364_v43 = vld [vmem:[#allocation4 + $0xd8] sm:$0xff]  ;;  %v365_v45 = vld [vmem:[#allocation4 + $0xe0] sm:$0xff]  ;;  %v366_v46 = vld [vmem:[#allocation4 + $0xe8] sm:$0xff] }
  0x70   : > { %1484 = vmatpush1.bf16.msra.mxu0 %v1483_v9  ;;  %1574 = vmatpush1.bf16.msra.mxu1 %v1483_v9  ;;  %v1516_v44 = vpack.c.bf16 %v364_v43, %v363_v42  ;;  %v1519_v47 = vpack.c.bf16 %v366_v46, %v365_v45  ;;  %v367_v48 = vld [vmem:[#allocation4 + $0xf0] sm:$0xff]  ;;  %v368_v49 = vld [vmem:[#allocation4 + $0xf8] sm:$0xff]  ;;  %v633_v50 = vld [vmem:[%s2494_s3] sm:$0xff] }
  0x71   : > { %1485 = vmatprep.subr.bf16.mxu0 %v1867_v0  ;;  %1559 = vmatprep.subr.bf16.mxu1 %v1867_v0  ;;  %v634_v51 = vld [vmem:[%s2494_s3 + $0x8] sm:$0xff]  ;;  %v1522_v52 = vpack.c.bf16 %v368_v49, %v367_v48  ;;  %v635_v54 = vld [vmem:[%s2494_s3 + $0x10] sm:$0xff]  ;;  %v636_v55 = vld [vmem:[%s2494_s3 + $0x18] sm:$0xff] }
  0x72   : > { %v1524_v53 = vpack.c.bf16 %v634_v51, %v633_v50  ;;  %v273_v56 = vld [vmem:[%s2030_s25] sm:$0xff]  ;;  %v276_v57 = vld [vmem:[%s2030_s25 + $0x18] sm:$0xff]  ;;  %v1528_v60 = vpack.c.bf16 %v636_v55, %v635_v54  ;;  %v638_v62 = vld [vmem:[%s2494_s3 + $0x28] sm:$0xff] }
  0x73   : > { %v321_v58 = vld [vmem:[%s2030_s25 + $0x180] sm:$0xff]  ;;  %v324_v59 = vld [vmem:[%s2030_s25 + $0x198] sm:$0xff]  ;;  %v275_v63 = vld [vmem:[%s2030_s25 + $0x10] sm:$0xff] }
  0x74   : > { %1487 = vmatpush1.bf16.msra.mxu0 %v1486_v13  ;;  %1575 = vmatpush1.bf16.msra.mxu1 %v1486_v13  ;;  %v637_v61 = vld [vmem:[%s2494_s3 + $0x20] sm:$0xff]  ;;  %v323_v1 = vld [vmem:[%s2030_s25 + $0x190] sm:$0xff]  ;;  %v326_v2 = vld [vmem:[%s2030_s25 + $0x1a8] sm:$0xff] }
  0x75   : > { %1488 = vmatprep.subr.bf16.mxu0 %v1867_v0  ;;  %1560 = vmatprep.subr.bf16.mxu1 %v1867_v0  ;;  %v1532_v3 = vpack.c.bf16 %v638_v62, %v637_v61  ;;  %v639_v4 = vld [vmem:[%s2494_s3 + $0x30] sm:$0xff]  ;;  %v640_v5 = vld [vmem:[%s2494_s3 + $0x38] sm:$0xff]  ;;  %v277_v6 = vld [vmem:[%s2030_s25 + $0x20] sm:$0xff] }
  0x76   : > { %v280_v7 = vld [vmem:[%s2030_s25 + $0x38] sm:$0xff]  ;;  %v325_v8 = vld [vmem:[%s2030_s25 + $0x1a0] sm:$0xff]  ;;  %v1536_v10 = vpack.c.bf16 %v640_v5, %v639_v4  ;;  %v642_v12 = vld [vmem:[%s2494_s3 + $0x48] sm:$0xff] }
  0x77   : > { %v328_v9 = vld [vmem:[%s2030_s25 + $0x1b8] sm:$0xff]  ;;  %v641_v11 = vld [vmem:[%s2494_s3 + $0x40] sm:$0xff]  ;;  %v279_v13 = vld [vmem:[%s2030_s25 + $0x30] sm:$0xff] }
  0x78   : > { %1490 = vmatpush1.bf16.msra.mxu0 %v1489_v16  ;;  %1576 = vmatpush1.bf16.msra.mxu1 %v1489_v16  ;;  %v282_v14 = vld [vmem:[%s2030_s25 + $0x48] sm:$0xff]  ;;  %v327_v15 = vld [vmem:[%s2030_s25 + $0x1b0] sm:$0xff]  ;;  %v1540_v17 = vpack.c.bf16 %v642_v12, %v641_v11  ;;  %v281_v20 = vld [vmem:[%s2030_s25 + $0x40] sm:$0xff] }
  0x79   : > { %1491 = vmatprep.subr.bf16.mxu0 %v1867_v0  ;;  %1561 = vmatprep.subr.bf16.mxu1 %v1867_v0  ;;  %v330_v16 = vld [vmem:[%s2030_s25 + $0x1c8] sm:$0xff]  ;;  %v643_v18 = vld [vmem:[%s2494_s3 + $0x50] sm:$0xff]  ;;  %v284_v21 = vld [vmem:[%s2030_s25 + $0x58] sm:$0xff] }
  0x7a   : > { %v332_v23 = vld [vmem:[%s2030_s25 + $0x1d8] sm:$0xff]  ;;  %v283_v25 = vld [vmem:[%s2030_s25 + $0x50] sm:$0xff]  ;;  %v334_v28 = vld [vmem:[%s2030_s25 + $0x1e8] sm:$0xff] }
  0x7b   : > { %v331_v27 = vld [vmem:[%s2030_s25 + $0x1d0] sm:$0xff]  ;;  %v288_v30 = vld [vmem:[%s2030_s25 + $0x78] sm:$0xff]  ;;  %v333_v31 = vld [vmem:[%s2030_s25 + $0x1e0] sm:$0xff] }
  0x7c   : > { %1493 = vmatpush1.bf16.msra.mxu0 %v1492_v19  ;;  %1577 = vmatpush1.bf16.msra.mxu1 %v1492_v19  ;;  %v644_v19 = vld [vmem:[%s2494_s3 + $0x58] sm:$0xff]  ;;  %v287_v33 = vld [vmem:[%s2030_s25 + $0x70] sm:$0xff]  ;;  %v290_v34 = vld [vmem:[%s2030_s25 + $0x88] sm:$0xff] }
  0x7d   : > { %1494 = vmatprep.subr.bf16.mxu0 %v1867_v0  ;;  %1562 = vmatprep.subr.bf16.mxu1 %v1867_v0  ;;  %v1544_v24 = vpack.c.bf16 %v644_v19, %v643_v18  ;;  %v289_v36 = vld [vmem:[%s2030_s25 + $0x80] sm:$0xff]  ;;  %v292_v37 = vld [vmem:[%s2030_s25 + $0x98] sm:$0xff]  ;;  %v294_v39 = vld [vmem:[%s2030_s25 + $0xa8] sm:$0xff] }
  0x7e   : > { %v293_v40 = vld [vmem:[%s2030_s25 + $0xa0] sm:$0xff]  ;;  %v295_v42 = vld [vmem:[%s2030_s25 + $0xb0] sm:$0xff]  ;;  %v298_v43 = vld [vmem:[%s2030_s25 + $0xc8] sm:$0xff] }
  0x7f   : > { %v300_v45 = vld [vmem:[%s2030_s25 + $0xd8] sm:$0xff]  ;;  %v299_v46 = vld [vmem:[%s2030_s25 + $0xd0] sm:$0xff]  ;;  %v301_v48 = vld [vmem:[%s2030_s25 + $0xe0] sm:$0xff] }
  0x80   : > { %1496 = vmatpush1.bf16.msra.mxu0 %v1495_v22  ;;  %1578 = vmatpush1.bf16.msra.mxu1 %v1495_v22  ;;  %v329_v22 = vld [vmem:[%s2030_s25 + $0x1c0] sm:$0xff]  ;;  %v304_v49 = vld [vmem:[%s2030_s25 + $0xf8] sm:$0xff]  ;;  %v303_v50 = vld [vmem:[%s2030_s25 + $0xf0] sm:$0xff] }
  0x81   : > { %1497 = vmatprep.subr.bf16.mxu0 %v1867_v0  ;;  %1563 = vmatprep.subr.bf16.mxu1 %v1867_v0  ;;  %v306_v51 = vld [vmem:[%s2030_s25 + $0x108] sm:$0xff]  ;;  %v307_v54 = vld [vmem:[%s2030_s25 + $0x110] sm:$0xff]  ;;  %v316_v61 = vld [vmem:[%s2030_s25 + $0x158] sm:$0xff] }
  0x82   : > { %v310_v55 = vld [vmem:[%s2030_s25 + $0x128] sm:$0xff]  ;;  %v315_v62 = vld [vmem:[%s2030_s25 + $0x150] sm:$0xff]  ;;  %v648_v5 = vld [vmem:[%s2494_s3 + $0x78] sm:$0xff] }
  0x83   : > { %v647_v4 = vld [vmem:[%s2494_s3 + $0x70] sm:$0xff] }
  0x84   : > { %1499 = vmatpush1.bf16.msra.mxu0 %v1498_v26  ;;  %1579 = vmatpush1.bf16.msra.mxu1 %v1498_v26  ;;  %v286_v26 = vld [vmem:[%s2030_s25 + $0x68] sm:$0xff] }
  0x85   : > { %1500 = vmatprep.subr.bf16.mxu0 %v1867_v0  ;;  %1564 = vmatprep.subr.bf16.mxu1 %v1867_v0 }
  0x88   : > { %1502 = vmatpush1.bf16.msra.mxu0 %v1501_v29  ;;  %1580 = vmatpush1.bf16.msra.mxu1 %v1501_v29  ;;  %v285_v29 = vld [vmem:[%s2030_s25 + $0x60] sm:$0xff] }
  0x89   : > { %1503 = vmatprep.subr.bf16.mxu0 %v1867_v0  ;;  %1565 = vmatprep.subr.bf16.mxu1 %v1867_v0 }
  0x8c   : > { %1505 = vmatpush1.bf16.msra.mxu0 %v1504_v32  ;;  %1581 = vmatpush1.bf16.msra.mxu1 %v1504_v32  ;;  %v336_v32 = vld [vmem:[%s2030_s25 + $0x1f8] sm:$0xff] }
  0x8d   : > { %1506 = vmatprep.subr.bf16.mxu0 %v1867_v0  ;;  %1566 = vmatprep.subr.bf16.mxu1 %v1867_v0 }
  0x90   : > { %1508 = vmatpush1.bf16.msra.mxu0 %v1507_v35  ;;  %1582 = vmatpush1.bf16.msra.mxu1 %v1507_v35  ;;  %v335_v35 = vld [vmem:[%s2030_s25 + $0x1f0] sm:$0xff] }
  0x91   : > { %1509 = vmatprep.subr.bf16.mxu0 %v1867_v0  ;;  %1567 = vmatprep.subr.bf16.mxu1 %v1867_v0 }
  0x94   : > { %1511 = vmatpush1.bf16.msra.mxu0 %v1510_v38  ;;  %1583 = vmatpush1.bf16.msra.mxu1 %v1510_v38  ;;  %v291_v38 = vld [vmem:[%s2030_s25 + $0x90] sm:$0xff] }
  0x95   : > { %1512 = vmatprep.subr.bf16.mxu0 %v1867_v0  ;;  %1568 = vmatprep.subr.bf16.mxu1 %v1867_v0 }
  0x98   : > { %1514 = vmatpush1.bf16.msra.mxu0 %v1513_v41  ;;  %1584 = vmatpush1.bf16.msra.mxu1 %v1513_v41  ;;  %v296_v41 = vld [vmem:[%s2030_s25 + $0xb8] sm:$0xff] }
  0x99   : > { %1515 = vmatprep.subr.bf16.mxu0 %v1867_v0  ;;  %1569 = vmatprep.subr.bf16.mxu1 %v1867_v0 }
  0x9c   : > { %1517 = vmatpush1.bf16.msra.mxu0 %v1516_v44  ;;  %1585 = vmatpush1.bf16.msra.mxu1 %v1516_v44  ;;  %v297_v44 = vld [vmem:[%s2030_s25 + $0xc0] sm:$0xff] }
  0x9d   : > { %1518 = vmatprep.subr.bf16.mxu0 %v1867_v0  ;;  %1570 = vmatprep.subr.bf16.mxu1 %v1867_v0 }
  0xa0   : > { %1520 = vmatpush1.bf16.msra.mxu0 %v1519_v47  ;;  %1586 = vmatpush1.bf16.msra.mxu1 %v1519_v47  ;;  %v302_v47 = vld [vmem:[%s2030_s25 + $0xe8] sm:$0xff] }
  0xa1   : > { %1521 = vmatprep.subr.bf16.mxu0 %v1867_v0  ;;  %1571 = vmatprep.subr.bf16.mxu1 %v1867_v0  ;;  %v278_v0 = vld [vmem:[%s2030_s25 + $0x28] sm:$0xff] }
  0xa4   : > { %1523 = vmatpush1.bf16.msra.mxu0 %v1522_v52  ;;  %1587 = vmatpush1.bf16.msra.mxu1 %v1522_v52  ;;  %v305_v52 = vld [vmem:[%s2030_s25 + $0x100] sm:$0xff] }
  0xa5   : > { %1525 = vmatprep.subr.bf16.mxu1 %v1524_v53 }
  0xa7   : > { %441 = vmatmul.mubr.f32.vlgmr.msra.gmra.mrb[0].mxu0 %v273_v56  ;;  %561 = vmatmul.mubr.f32.vlgmr.msra.gmra.mrb[0].mxu1 %v321_v58  ;;  %v309_v56 = vld [vmem:[%s2030_s25 + $0x120] sm:$0xff]  ;;  %v311_v58 = vld [vmem:[%s2030_s25 + $0x130] sm:$0xff] }
  0xa8   : > { %445 = vmatprep.mubr.f32.mxu0 %v276_v57  ;;  %565 = vmatprep.mubr.f32.mxu1 %v324_v59  ;;  %v312_v57 = vld [vmem:[%s2030_s25 + $0x138] sm:$0xff]  ;;  %v314_v59 = vld [vmem:[%s2030_s25 + $0x148] sm:$0xff] }
  0xa9   : > { %1527 = vmatpush3.bf16.msra.mxu1 %v1524_v53  ;;  %v308_v53 = vld [vmem:[%s2030_s25 + $0x118] sm:$0xff] }
  0xaa   : > { %1529 = vmatprep.subr.bf16.mxu1 %v1528_v60 }
  0xab   : > { %446 = vmatmul.mubr.f32.gmra.mrb[2].mxu0 %v275_v63  ;;  %566 = vmatmul.mubr.f32.gmra.mrb[2].mxu1 %v323_v1  ;;  %v645_v63 = vld [vmem:[%s2494_s3 + $0x60] sm:$0xff]  ;;  %v318_v1 = vld [vmem:[%s2030_s25 + $0x168] sm:$0xff] }
  0xac   : > { %450 = vmatprep.mubr.f32.mxu0 %v278_v0  ;;  %570 = vmatprep.mubr.f32.mxu1 %v326_v2  ;;  %v646_v0 = vld [vmem:[%s2494_s3 + $0x68] sm:$0xff] }
  0xad   : > { %1531 = vmatpush3.bf16.msra.mxu1 %v1528_v60  ;;  %v313_v60 = vld [vmem:[%s2030_s25 + $0x140] sm:$0xff]  ;;  %v1548_v2 = vpack.c.bf16 %v646_v0, %v645_v63 }
  0xae   : > { %1533 = vmatprep.subr.bf16.mxu1 %v1532_v3 }
  0xaf   : > { %451 = vmatmul.mubr.f32.gmra.mrb[4].mxu0 %v277_v6  ;;  %571 = vmatmul.mubr.f32.gmra.mrb[4].mxu1 %v325_v8  ;;  %v320_v6 = vld [vmem:[%s2030_s25 + $0x178] sm:$0xff]  ;;  %v319_v8 = vld [vmem:[%s2030_s25 + $0x170] sm:$0xff] }
  0xb0   : > { %455 = vmatprep.mubr.f32.mxu0 %v280_v7  ;;  %575 = vmatprep.mubr.f32.mxu1 %v328_v9  ;;  %v1552_v7 = vpack.c.bf16 %v648_v5, %v647_v4  ;;  %v2187_v9 = vld [vmem:[%s2493_s2] ss:$0 sm:$0xff] }
  0xb1   : > { %1535 = vmatpush3.bf16.msra.mxu1 %v1532_v3  ;;  %v317_v3 = vld [vmem:[%s2030_s25 + $0x160] sm:$0xff] }
  0xb2   : > { %1537 = vmatprep.subr.bf16.mxu1 %v1536_v10 }
  0xb3   : > { %456 = vmatmul.mubr.f32.gmra.mrb[6].mxu0 %v279_v13  ;;  %576 = vmatmul.mubr.f32.gmra.mrb[6].mxu1 %v327_v15 }
  0xb4   : > { %460 = vmatprep.mubr.f32.mxu0 %v282_v14  ;;  %580 = vmatprep.mubr.f32.mxu1 %v330_v16 }
  0xb5   : > { %1539 = vmatpush3.bf16.msra.mxu1 %v1536_v10 }
  0xb6   : > { %1541 = vmatprep.subr.bf16.mxu1 %v1540_v17 }
  0xb7   : > { %461 = vmatmul.mubr.f32.gmra.mrb[8].mxu0 %v281_v20  ;;  %581 = vmatmul.mubr.f32.gmra.mrb[8].mxu1 %v329_v22 }
  0xb8   : > { %465 = vmatprep.mubr.f32.mxu0 %v284_v21  ;;  %585 = vmatprep.mubr.f32.mxu1 %v332_v23 }
  0xb9   : > { %1543 = vmatpush3.bf16.msra.mxu1 %v1540_v17 }
  0xba   : > { %1545 = vmatprep.subr.bf16.mxu1 %v1544_v24 }
  0xbb   : > { %466 = vmatmul.mubr.f32.gmra.mrb[10].mxu0 %v283_v25  ;;  %586 = vmatmul.mubr.f32.gmra.mrb[10].mxu1 %v331_v27 }
  0xbc   : > { %470 = vmatprep.mubr.f32.mxu0 %v286_v26  ;;  %590 = vmatprep.mubr.f32.mxu1 %v334_v28 }
  0xbd   : > { %1547 = vmatpush3.bf16.msra.mxu1 %v1544_v24 }
  0xbe   : > { %1549 = vmatprep.subr.bf16.mxu1 %v1548_v2 }
  0xbf   : > { %471 = vmatmul.mubr.f32.gmra.mrb[12].mxu0 %v285_v29  ;;  %591 = vmatmul.mubr.f32.gmra.mrb[12].mxu1 %v333_v31 }
  0xc0   : > { %475 = vmatprep.mubr.f32.mxu0 %v288_v30  ;;  %595 = vmatprep.mubr.f32.mxu1 %v336_v32 }
  0xc1   : > { %1551 = vmatpush3.bf16.msra.mxu1 %v1548_v2 }
  0xc2   : > { %1553 = vmatprep.subr.bf16.mxu1 %v1552_v7 }
  0xc3   : > { %476 = vmatmul.mubr.f32.gmra.mrb[14].mxu0 %v287_v33  ;;  %596 = vmatmul.mubr.f32.gmra.mrb[14].mxu1 %v335_v35 }
  0xc4   : > { %480 = vmatprep.mubr.f32.mxu0 %v290_v34 }
  0xc5   : > { %1555 = vmatpush3.bf16.msra.mxu1 %v1552_v7 }
  0xc7   : > { %481 = vmatmul.mubr.f32.gmra.mrb[16].mxu0 %v289_v36 }
  0xc8   : > { %485 = vmatprep.mubr.f32.mxu0 %v292_v37 }
  0xcb   : > { %486 = vmatmul.mubr.f32.gmra.mrb[18].mxu0 %v291_v38 }
  0xcc   : > { %490 = vmatprep.mubr.f32.mxu0 %v294_v39 }
  0xcf   : > { %491 = vmatmul.mubr.f32.gmra.mrb[20].mxu0 %v293_v40 }
  0xd0   : > { %495 = vmatprep.mubr.f32.mxu0 %v296_v41 }
  0xd3   : > { %496 = vmatmul.mubr.f32.gmra.mrb[22].mxu0 %v295_v42 }
  0xd4   : > { %500 = vmatprep.mubr.f32.mxu0 %v298_v43 }
  0xd7   : > { %501 = vmatmul.mubr.f32.gmra.mrb[24].mxu0 %v297_v44 }
  0xd8   : > { %505 = vmatprep.mubr.f32.mxu0 %v300_v45 }
  0xdb   : > { %506 = vmatmul.mubr.f32.gmra.mrb[26].mxu0 %v299_v46 }
  0xdc   : > { %510 = vmatprep.mubr.f32.mxu0 %v302_v47 }
  0xdf   : > { %511 = vmatmul.mubr.f32.gmra.mrb[28].mxu0 %v301_v48 }
  0xe0   : > { %515 = vmatprep.mubr.f32.mxu0 %v304_v49 }
  0xe3   : > { %516 = vmatmul.mubr.f32.gmra.mrb[30].mxu0 %v303_v50 }
  0xe4   : > { %520 = vmatprep.mubr.f32.mxu0 %v306_v51 }
  0xe7   : > { %521 = vmatmul.mubr.f32.gmra.mrb[32].mxu0 %v305_v52 }
  0xe8   : > { %525 = vmatprep.mubr.f32.mxu0 %v308_v53 }
  0xeb   : > { %526 = vmatmul.mubr.f32.gmra.mrb[34].mxu0 %v307_v54 }
  0xec   : > { %530 = vmatprep.mubr.f32.mxu0 %v310_v55 }
  0xef   : > { %531 = vmatmul.mubr.f32.gmra.mrb[36].mxu0 %v309_v56 }
  0xf0   : > { %535 = vmatprep.mubr.f32.mxu0 %v312_v57 }
  0xf3   : > { %536 = vmatmul.mubr.f32.gmra.mrb[38].mxu0 %v311_v58 }
  0xf4   : > { %540 = vmatprep.mubr.f32.mxu0 %v314_v59 }
  0xf7   : > { %541 = vmatmul.mubr.f32.gmra.mrb[40].mxu0 %v313_v60 }
  0xf8   : > { %545 = vmatprep.mubr.f32.mxu0 %v316_v61 }
  0xfb   : > { %546 = vmatmul.mubr.f32.gmra.mrb[42].mxu0 %v315_v62 }
  0xfc   : > { %550 = vmatprep.mubr.f32.mxu0 %v318_v1 }
  0xff   : > { %551 = vmatmul.mubr.f32.gmra.mrb[44].mxu0 %v317_v3 }
 0x100   : > { %555 = vmatprep.mubr.f32.mxu0 %v320_v6 }
 0x103   : > { %556 = vmatmul.mubr.f32.gmra.mrb[46].mxu0 %v319_v8 }
 0x17a   : > { %v442_v10 = vpop.f32.mrb[0].mxu0  ;;  %v2190_v13 = vpop.f32.mrb[0].mxu1 }
 0x17b   : > { %v443_v11 = vadd.f32 %v2187_v9, %v442_v10  ;;  %v444_v12 = vpop.f32.mrb[1].mxu0  ;;  %v564_v14 = vpop.f32.mrb[1].mxu1 }
 0x17d   : > { %v601_v15 = vmax.f32 %v443_v11, 0.0 }
 0x17e   : > { %v447_v16 = vpop.f32.mrb[2].mxu0  ;;  %v2193_v19 = vpop.f32.mrb[2].mxu1 }
 0x17f   : > { %v448_v17 = vadd.f32 %v2187_v9, %v447_v16  ;;  %v449_v18 = vpop.f32.mrb[3].mxu0  ;;  %1428 = vmatprep.mubr.f32.mxu1 %v601_v15  ;;  %v569_v20 = vpop.f32.mrb[3].mxu1 }
 0x181   : > { %v602_v21 = vmax.f32 %v448_v17, 0.0 }
 0x182   : > { %v452_v22 = vpop.f32.mrb[4].mxu0  ;;  %v2196_v25 = vpop.f32.mrb[4].mxu1 }
 0x183   : > { %v453_v23 = vadd.f32 %v2187_v9, %v452_v22  ;;  %v454_v24 = vpop.f32.mrb[5].mxu0  ;;  %1429 = vmatmul.mubr.f32.vlgmr.msra.gmra.mrb[16].mxu1 %v602_v21  ;;  %v574_v26 = vpop.f32.mrb[5].mxu1 }
 0x185   : > { %v603_v27 = vmax.f32 %v453_v23, 0.0 }
 0x186   : > { %v457_v28 = vpop.f32.mrb[6].mxu0  ;;  %v2199_v31 = vpop.f32.mrb[6].mxu1 }
 0x187   : > { %v458_v29 = vadd.f32 %v2187_v9, %v457_v28  ;;  %v459_v30 = vpop.f32.mrb[7].mxu0  ;;  %1431 = vmatprep.mubr.f32.mxu1 %v603_v27  ;;  %v579_v32 = vpop.f32.mrb[7].mxu1 }
 0x189   : > { %v604_v33 = vmax.f32 %v458_v29, 0.0 }
 0x18a   : > { %v462_v34 = vpop.f32.mrb[8].mxu0  ;;  %v2202_v37 = vpop.f32.mrb[8].mxu1 }
 0x18b   : > { %v463_v35 = vadd.f32 %v2187_v9, %v462_v34  ;;  %v464_v36 = vpop.f32.mrb[9].mxu0  ;;  %1432 = vmatmul.mubr.f32.gmra.mrb[18].mxu1 %v604_v33  ;;  %v584_v38 = vpop.f32.mrb[9].mxu1 }
 0x18d   : > { %v605_v39 = vmax.f32 %v463_v35, 0.0 }
 0x18e   : > { %v467_v40 = vpop.f32.mrb[10].mxu0  ;;  %v2205_v43 = vpop.f32.mrb[10].mxu1 }
 0x18f   : > { %v468_v41 = vadd.f32 %v2187_v9, %v467_v40  ;;  %v469_v42 = vpop.f32.mrb[11].mxu0  ;;  %1434 = vmatprep.mubr.f32.mxu1 %v605_v39  ;;  %v589_v44 = vpop.f32.mrb[11].mxu1 }
 0x191   : > { %v606_v45 = vmax.f32 %v468_v41, 0.0 }
 0x192   : > { %v472_v46 = vpop.f32.mrb[12].mxu0  ;;  %v2208_v49 = vpop.f32.mrb[12].mxu1 }
 0x193   : > { %v473_v47 = vadd.f32 %v2187_v9, %v472_v46  ;;  %v474_v48 = vpop.f32.mrb[13].mxu0  ;;  %1435 = vmatmul.mubr.f32.gmra.mrb[20].mxu1 %v606_v45  ;;  %v594_v50 = vpop.f32.mrb[13].mxu1 }
 0x195   : > { %v607_v51 = vmax.f32 %v473_v47, 0.0 }
 0x196   : > { %v477_v52 = vpop.f32.mrb[14].mxu0  ;;  %v2211_v55 = vpop.f32.mrb[14].mxu1 }
 0x197   : > { %v478_v53 = vadd.f32 %v2187_v9, %v477_v52  ;;  %v479_v54 = vpop.f32.mrb[15].mxu0  ;;  %1437 = vmatprep.mubr.f32.mxu1 %v607_v51  ;;  %v599_v56 = vpop.f32.mrb[15].mxu1 }
 0x199   : > { %v608_v57 = vmax.f32 %v478_v53, 0.0 }
 0x19a   : > { %v482_v58 = vpop.f32.mrb[16].mxu0 }
 0x19b   : > { %v483_v59 = vadd.f32 %v2187_v9, %v482_v58  ;;  %v484_v60 = vpop.f32.mrb[17].mxu0  ;;  %1438 = vmatmul.mubr.f32.gmra.mrb[22].mxu1 %v608_v57 }
 0x19d   : > { %v609_v61 = vmax.f32 %v483_v59, 0.0 }
 0x19e   : > { %v487_v62 = vpop.f32.mrb[18].mxu0 }
 0x19f   : > { %v488_v63 = vadd.f32 %v2187_v9, %v487_v62  ;;  %v489_v0 = vpop.f32.mrb[19].mxu0  ;;  %1440 = vmatprep.mubr.f32.mxu1 %v609_v61 }
 0x1a1   : > { %v610_v1 = vmax.f32 %v488_v63, 0.0  ;;  %v563_v63 = vadd.f32 %v2187_v9, %v2190_v13 }
 0x1a2   : > { %v492_v2 = vpop.f32.mrb[20].mxu0 }
 0x1a3   : > { %v493_v3 = vadd.f32 %v2187_v9, %v492_v2  ;;  %v494_v4 = vpop.f32.mrb[21].mxu0  ;;  %1441 = vmatmul.mubr.f32.gmra.mrb[24].mxu1 %v610_v1 }
 0x1a5   : > { %v611_v5 = vmax.f32 %v493_v3, 0.0  ;;  %v568_v3 = vadd.f32 %v2187_v9, %v2193_v19  ;;  %v593_v19 = vadd.f32 %v2187_v9, %v2208_v49 }
 0x1a6   : > { %v497_v6 = vpop.f32.mrb[22].mxu0 }
 0x1a7   : > { %v498_v7 = vadd.f32 %v2187_v9, %v497_v6  ;;  %v499_v8 = vpop.f32.mrb[23].mxu0  ;;  %1443 = vmatprep.mubr.f32.mxu1 %v611_v5  ;;  %v625_v5 = vmax.f32 %v563_v63, 0.0  ;;  %v573_v6 = vadd.f32 %v2187_v9, %v2196_v25  ;;  %v588_v25 = vadd.f32 %v2187_v9, %v2205_v43 }
 0x1a8   : > { %v578_v8 = vadd.f32 %v2187_v9, %v2199_v31  ;;  %v631_v31 = vmax.f32 %v593_v19, 0.0 }
 0x1a9   : > { %v612_v10 = vmax.f32 %v498_v7, 0.0  ;;  %v626_v7 = vmax.f32 %v568_v3, 0.0  ;;  %v627_v13 = vmax.f32 %v573_v6, 0.0 }
 0x1aa   : > { %v502_v11 = vpop.f32.mrb[24].mxu0 }
 0x1ab   : > { %v503_v12 = vadd.f32 %v2187_v9, %v502_v11  ;;  %v504_v14 = vpop.f32.mrb[25].mxu0  ;;  %1444 = vmatmul.mubr.f32.gmra.mrb[26].mxu1 %v612_v10  ;;  %v583_v10 = vadd.f32 %v2187_v9, %v2202_v37  ;;  %v628_v11 = vmax.f32 %v578_v8, 0.0  ;;  %v2248_v37 = vld [vmem:[%s2495_s4] ss:$0 sm:$0xff] }
 0x1ac   : > { %v598_v14 = vadd.f32 %v2187_v9, %v2211_v55 }
 0x1ad   : > { %v613_v15 = vmax.f32 %v503_v12, 0.0  ;;  %v629_v12 = vmax.f32 %v583_v10, 0.0 }
 0x1ae   : > { %v507_v16 = vpop.f32.mrb[26].mxu0 }
 0x1af   : > { %v508_v17 = vadd.f32 %v2187_v9, %v507_v16  ;;  %v509_v18 = vpop.f32.mrb[27].mxu0  ;;  %1446 = vmatprep.mubr.f32.mxu1 %v613_v15  ;;  %v630_v15 = vmax.f32 %v588_v25, 0.0  ;;  %v632_v16 = vmax.f32 %v598_v14, 0.0 }
 0x1b1   : > { %v614_v20 = vmax.f32 %v508_v17, 0.0 }
 0x1b2   : > { %v512_v21 = vpop.f32.mrb[28].mxu0 }
 0x1b3   : > { %v513_v22 = vadd.f32 %v2187_v9, %v512_v21  ;;  %v514_v23 = vpop.f32.mrb[29].mxu0  ;;  %1447 = vmatmul.mubr.f32.gmra.mrb[28].mxu1 %v614_v20 }
 0x1b5   : > { %v615_v24 = vmax.f32 %v513_v22, 0.0 }
 0x1b6   : > { %v517_v26 = vpop.f32.mrb[30].mxu0 }
 0x1b7   : > { %v518_v27 = vadd.f32 %v2187_v9, %v517_v26  ;;  %v519_v28 = vpop.f32.mrb[31].mxu0  ;;  %1449 = vmatprep.mubr.f32.mxu1 %v615_v24 }
 0x1b9   : > { %v616_v29 = vmax.f32 %v518_v27, 0.0 }
 0x1ba   : > { %v522_v30 = vpop.f32.mrb[32].mxu0 }
 0x1bb   : > { %v523_v32 = vadd.f32 %v2187_v9, %v522_v30  ;;  %v524_v33 = vpop.f32.mrb[33].mxu0  ;;  %1450 = vmatmul.mubr.f32.gmra.mrb[30].mxu1 %v616_v29 }
 0x1bd   : > { %v617_v34 = vmax.f32 %v523_v32, 0.0 }
 0x1be   : > { %v527_v35 = vpop.f32.mrb[34].mxu0 }
 0x1bf   : > { %v528_v36 = vadd.f32 %v2187_v9, %v527_v35  ;;  %v529_v38 = vpop.f32.mrb[35].mxu0  ;;  %1452 = vmatprep.mubr.f32.mxu1 %v617_v34 }
 0x1c1   : > { %v618_v39 = vmax.f32 %v528_v36, 0.0 }
 0x1c2   : > { %v532_v40 = vpop.f32.mrb[36].mxu0 }
 0x1c3   : > { %v533_v41 = vadd.f32 %v2187_v9, %v532_v40  ;;  %v534_v42 = vpop.f32.mrb[37].mxu0  ;;  %1453 = vmatmul.mubr.f32.gmra.mrb[32].mxu1 %v618_v39 }
 0x1c5   : > { %v619_v44 = vmax.f32 %v533_v41, 0.0 }
 0x1c6   : > { %v537_v45 = vpop.f32.mrb[38].mxu0 }
 0x1c7   : > { %v538_v46 = vadd.f32 %v2187_v9, %v537_v45  ;;  %v539_v47 = vpop.f32.mrb[39].mxu0  ;;  %1455 = vmatprep.mubr.f32.mxu1 %v619_v44 }
 0x1c9   : > { %v620_v48 = vmax.f32 %v538_v46, 0.0 }
 0x1ca   : > { %v542_v50 = vpop.f32.mrb[40].mxu0 }
 0x1cb   : > { %v543_v51 = vadd.f32 %v2187_v9, %v542_v50  ;;  %v544_v52 = vpop.f32.mrb[41].mxu0  ;;  %1456 = vmatmul.mubr.f32.gmra.mrb[34].mxu1 %v620_v48 }
 0x1cd   : > { %v621_v53 = vmax.f32 %v543_v51, 0.0 }
 0x1ce   : > { %v547_v54 = vpop.f32.mrb[42].mxu0 }
 0x1cf   : > { %v548_v56 = vadd.f32 %v2187_v9, %v547_v54  ;;  %v549_v57 = vpop.f32.mrb[43].mxu0  ;;  %1458 = vmatprep.mubr.f32.mxu1 %v621_v53 }
 0x1d1   : > { %v622_v58 = vmax.f32 %v548_v56, 0.0 }
 0x1d2   : > { %v552_v59 = vpop.f32.mrb[44].mxu0 }
 0x1d3   : > { %v553_v60 = vadd.f32 %v2187_v9, %v552_v59  ;;  %v554_v61 = vpop.f32.mrb[45].mxu0  ;;  %1459 = vmatmul.mubr.f32.gmra.mrb[36].mxu1 %v622_v58 }
 0x1d5   : > { %v623_v62 = vmax.f32 %v553_v60, 0.0 }
 0x1d6   : > { %v557_v0 = vpop.f32.mrb[46].mxu0 }
 0x1d7   : > { %v558_v1 = vadd.f32 %v2187_v9, %v557_v0  ;;  %v559_v2 = vpop.f32.mrb[47].mxu0  ;;  %1461 = vmatprep.mubr.f32.mxu1 %v623_v62 }
 0x1d9   : > { %v624_v4 = vmax.f32 %v558_v1, 0.0 }
 0x1db   : > { %1462 = vmatmul.mubr.f32.gmra.mrb[38].mxu1 %v624_v4 }
 0x1dc   : > { %1464 = vmatprep.mubr.f32.mxu1 %v625_v5 }
 0x1df   : > { %1465 = vmatmul.mubr.f32.gmra.mrb[40].mxu1 %v626_v7 }
 0x1e0   : > { %1467 = vmatprep.mubr.f32.mxu1 %v627_v13 }
 0x1e3   : > { %1468 = vmatmul.mubr.f32.gmra.mrb[42].mxu1 %v628_v11 }
 0x1e4   : > { %1470 = vmatprep.mubr.f32.mxu1 %v629_v12 }
 0x1e7   : > { %1471 = vmatmul.mubr.f32.gmra.mrb[44].mxu1 %v630_v15 }
 0x1e8   : > { %1473 = vmatprep.mubr.f32.mxu1 %v631_v31 }
 0x1eb   : > { %1474 = vmatmul.mubr.f32.gmra.mrb[46].mxu1 %v632_v16 }
 0x256   : > { %v1430_v49 = vpop.f32.mrb[16].mxu1 }
 0x257   : > { %v728_v43 = vadd.f32 %v1430_v49, %v2248_v37  ;;  %v722_v17 = vpop.f32.mrb[17].mxu1 }
 0x258   : > { %v723_v9 = vadd.f32 %v2248_v37, %v722_v17 }
 0x259   : > { %v882_v55 = vmax.f32 %v728_v43, 0.0 }
 0x25a   : > { %v881_v18 = vmax.f32 %v723_v9, 0.0 }
 0x25b   : > { %915 = vst.msk [vmem:[%s2253_s12 + $0x8] sm:$0xff] %vm913_vm0, %v882_v55 }
 0x25c   : > { %914 = vst.msk [vmem:[%s2253_s12] sm:$0xff] %vm913_vm0, %v881_v18 }
 0x25e   : > { %v1433_v20 = vpop.f32.mrb[18].mxu1 }
 0x25f   : > { %v738_v21 = vadd.f32 %v1433_v20, %v2248_v37  ;;  %v732_v22 = vpop.f32.mrb[19].mxu1 }
 0x260   : > { %v733_v23 = vadd.f32 %v2248_v37, %v732_v22 }
 0x261   : > { %v884_v24 = vmax.f32 %v738_v21, 0.0 }
 0x262   : > { %v883_v26 = vmax.f32 %v733_v23, 0.0 }
 0x263   : > { %917 = vst.msk [vmem:[%s2253_s12 + $0x18] sm:$0xff] %vm913_vm0, %v884_v24 }
 0x264   : > { %916 = vst.msk [vmem:[%s2253_s12 + $0x10] sm:$0xff] %vm913_vm0, %v883_v26 }
 0x266   : > { %v1436_v27 = vpop.f32.mrb[20].mxu1 }
 0x267   : > { %v748_v28 = vadd.f32 %v1436_v27, %v2248_v37  ;;  %v742_v29 = vpop.f32.mrb[21].mxu1 }
 0x268   : > { %v743_v30 = vadd.f32 %v2248_v37, %v742_v29 }
 0x269   : > { %v886_v32 = vmax.f32 %v748_v28, 0.0 }
 0x26a   : > { %v885_v33 = vmax.f32 %v743_v30, 0.0 }
 0x26b   : > { %919 = vst.msk [vmem:[%s2253_s12 + $0x28] sm:$0xff] %vm913_vm0, %v886_v32 }
 0x26c   : > { %918 = vst.msk [vmem:[%s2253_s12 + $0x20] sm:$0xff] %vm913_vm0, %v885_v33 }
 0x26e   : > { %v1439_v34 = vpop.f32.mrb[22].mxu1 }
 0x26f   : > { %v758_v35 = vadd.f32 %v1439_v34, %v2248_v37  ;;  %v752_v36 = vpop.f32.mrb[23].mxu1 }
 0x270   : > { %v753_v38 = vadd.f32 %v2248_v37, %v752_v36 }
 0x271   : > { %v888_v39 = vmax.f32 %v758_v35, 0.0 }
 0x272   : > { %v887_v40 = vmax.f32 %v753_v38, 0.0 }
 0x273   : > { %921 = vst.msk [vmem:[%s2253_s12 + $0x38] sm:$0xff] %vm913_vm0, %v888_v39 }
 0x274   : > { %920 = vst.msk [vmem:[%s2253_s12 + $0x30] sm:$0xff] %vm913_vm0, %v887_v40 }
 0x276   : > { %v1442_v41 = vpop.f32.mrb[24].mxu1 }
 0x277   : > { %v768_v42 = vadd.f32 %v1442_v41, %v2248_v37  ;;  %v762_v44 = vpop.f32.mrb[25].mxu1 }
 0x278   : > { %v763_v45 = vadd.f32 %v2248_v37, %v762_v44 }
 0x279   : > { %v890_v46 = vmax.f32 %v768_v42, 0.0 }
 0x27a   : > { %v889_v47 = vmax.f32 %v763_v45, 0.0 }
 0x27b   : > { %923 = vst.msk [vmem:[%s2253_s12 + $0x48] sm:$0xff] %vm913_vm0, %v890_v46 }
 0x27c   : > { %922 = vst.msk [vmem:[%s2253_s12 + $0x40] sm:$0xff] %vm913_vm0, %v889_v47 }
 0x27e   : > { %v1445_v48 = vpop.f32.mrb[26].mxu1 }
 0x27f   : > { %v778_v50 = vadd.f32 %v1445_v48, %v2248_v37  ;;  %v772_v51 = vpop.f32.mrb[27].mxu1 }
 0x280   : > { %v773_v52 = vadd.f32 %v2248_v37, %v772_v51 }
 0x281   : > { %v892_v53 = vmax.f32 %v778_v50, 0.0 }
 0x282   : > { %v891_v54 = vmax.f32 %v773_v52, 0.0 }
 0x283   : > { %925 = vst.msk [vmem:[%s2253_s12 + $0x58] sm:$0xff] %vm913_vm0, %v892_v53 }
 0x284   : > { %924 = vst.msk [vmem:[%s2253_s12 + $0x50] sm:$0xff] %vm913_vm0, %v891_v54 }
 0x286   : > { %v1448_v56 = vpop.f32.mrb[28].mxu1 }
 0x287   : > { %v788_v57 = vadd.f32 %v1448_v56, %v2248_v37  ;;  %v782_v58 = vpop.f32.mrb[29].mxu1 }
 0x288   : > { %v783_v59 = vadd.f32 %v2248_v37, %v782_v58 }
 0x289   : > { %v894_v60 = vmax.f32 %v788_v57, 0.0 }
 0x28a   : > { %v893_v61 = vmax.f32 %v783_v59, 0.0 }
 0x28b   : > { %927 = vst.msk [vmem:[%s2253_s12 + $0x68] sm:$0xff] %vm913_vm0, %v894_v60 }
 0x28c   : > { %926 = vst.msk [vmem:[%s2253_s12 + $0x60] sm:$0xff] %vm913_vm0, %v893_v61 }
 0x28e   : > { %v1451_v62 = vpop.f32.mrb[30].mxu1 }
 0x28f   : > { %v798_v63 = vadd.f32 %v1451_v62, %v2248_v37  ;;  %v792_v0 = vpop.f32.mrb[31].mxu1 }
 0x290   : > { %v793_v1 = vadd.f32 %v2248_v37, %v792_v0 }
 0x291   : > { %v896_v2 = vmax.f32 %v798_v63, 0.0 }
 0x292   : > { %v895_v3 = vmax.f32 %v793_v1, 0.0 }
 0x293   : > { %929 = vst.msk [vmem:[%s2253_s12 + $0x78] sm:$0xff] %vm913_vm0, %v896_v2 }
 0x294   : > { %928 = vst.msk [vmem:[%s2253_s12 + $0x70] sm:$0xff] %vm913_vm0, %v895_v3 }
 0x296   : > { %v1454_v4 = vpop.f32.mrb[32].mxu1 }
 0x297   : > { %v808_v5 = vadd.f32 %v1454_v4, %v2248_v37  ;;  %v802_v6 = vpop.f32.mrb[33].mxu1 }
 0x298   : > { %v803_v7 = vadd.f32 %v2248_v37, %v802_v6 }
 0x299   : > { %v898_v8 = vmax.f32 %v808_v5, 0.0 }
 0x29a   : > { %v897_v13 = vmax.f32 %v803_v7, 0.0 }
 0x29b   : > { %931 = vst.msk [vmem:[%s2253_s12 + $0x88] sm:$0xff] %vm913_vm0, %v898_v8 }
 0x29c   : > { %930 = vst.msk [vmem:[%s2253_s12 + $0x80] sm:$0xff] %vm913_vm0, %v897_v13 }
 0x29e   : > { %v1457_v10 = vpop.f32.mrb[34].mxu1 }
 0x29f   : > { %v818_v19 = vadd.f32 %v1457_v10, %v2248_v37  ;;  %v812_v11 = vpop.f32.mrb[35].mxu1 }
 0x2a0   : > { %v813_v25 = vadd.f32 %v2248_v37, %v812_v11 }
 0x2a1   : > { %v900_v12 = vmax.f32 %v818_v19, 0.0 }
 0x2a2   : > { %v899_v14 = vmax.f32 %v813_v25, 0.0 }
 0x2a3   : > { %933 = vst.msk [vmem:[%s2253_s12 + $0x98] sm:$0xff] %vm913_vm0, %v900_v12 }
 0x2a4   : > { %932 = vst.msk [vmem:[%s2253_s12 + $0x90] sm:$0xff] %vm913_vm0, %v899_v14 }
 0x2a6   : > { %v1460_v31 = vpop.f32.mrb[36].mxu1 }
 0x2a7   : > { %v828_v15 = vadd.f32 %v1460_v31, %v2248_v37  ;;  %v822_v16 = vpop.f32.mrb[37].mxu1 }
 0x2a8   : > { %v823_v49 = vadd.f32 %v2248_v37, %v822_v16 }
 0x2a9   : > { %v902_v43 = vmax.f32 %v828_v15, 0.0 }
 0x2aa   : > { %v901_v17 = vmax.f32 %v823_v49, 0.0 }
 0x2ab   : > { %935 = vst.msk [vmem:[%s2253_s12 + $0xa8] sm:$0xff] %vm913_vm0, %v902_v43 }
 0x2ac   : > { %934 = vst.msk [vmem:[%s2253_s12 + $0xa0] sm:$0xff] %vm913_vm0, %v901_v17 }
 0x2ae   : > { %v1463_v9 = vpop.f32.mrb[38].mxu1 }
 0x2af   : > { %v838_v55 = vadd.f32 %v1463_v9, %v2248_v37  ;;  %v832_v18 = vpop.f32.mrb[39].mxu1 }
 0x2b0   : > { %v833_v20 = vadd.f32 %v2248_v37, %v832_v18 }
 0x2b1   : > { %v904_v21 = vmax.f32 %v838_v55, 0.0 }
 0x2b2   : > { %v903_v22 = vmax.f32 %v833_v20, 0.0  ;;  %v1466_v23 = vpop.f32.mrb[40].mxu1 }
 0x2b3   : > { %937 = vst.msk [vmem:[%s2253_s12 + $0xb8] sm:$0xff] %vm913_vm0, %v904_v21  ;;  %v848_v24 = vadd.f32 %v1466_v23, %v2248_v37  ;;  %v842_v26 = vpop.f32.mrb[41].mxu1 }
 0x2b4   : > { %936 = vst.msk [vmem:[%s2253_s12 + $0xb0] sm:$0xff] %vm913_vm0, %v903_v22  ;;  %v843_v27 = vadd.f32 %v2248_v37, %v842_v26 }
 0x2b5   : > { %v906_v28 = vmax.f32 %v848_v24, 0.0 }
 0x2b6   : > { %v905_v29 = vmax.f32 %v843_v27, 0.0  ;;  %v1469_v30 = vpop.f32.mrb[42].mxu1 }
 0x2b7   : > { %939 = vst.msk [vmem:[%s2253_s12 + $0xc8] sm:$0xff] %vm913_vm0, %v906_v28  ;;  %v858_v32 = vadd.f32 %v1469_v30, %v2248_v37  ;;  %v852_v33 = vpop.f32.mrb[43].mxu1 }
 0x2b8   : > { %938 = vst.msk [vmem:[%s2253_s12 + $0xc0] sm:$0xff] %vm913_vm0, %v905_v29  ;;  %v853_v34 = vadd.f32 %v2248_v37, %v852_v33 }
 0x2b9   : > { %v908_v35 = vmax.f32 %v858_v32, 0.0 }
 0x2ba   : > { %v907_v36 = vmax.f32 %v853_v34, 0.0  ;;  %v1472_v38 = vpop.f32.mrb[44].mxu1 }
 0x2bb   : > { %941 = vst.msk [vmem:[%s2253_s12 + $0xd8] sm:$0xff] %vm913_vm0, %v908_v35  ;;  %v868_v39 = vadd.f32 %v1472_v38, %v2248_v37  ;;  %v862_v40 = vpop.f32.mrb[45].mxu1 }
 0x2bc   : > { %940 = vst.msk [vmem:[%s2253_s12 + $0xd0] sm:$0xff] %vm913_vm0, %v907_v36  ;;  %v863_v41 = vadd.f32 %v2248_v37, %v862_v40 }
 0x2bd   : > { %v910_v42 = vmax.f32 %v868_v39, 0.0 }
 0x2be   : > { %v909_v44 = vmax.f32 %v863_v41, 0.0  ;;  %v1475_v45 = vpop.f32.mrb[46].mxu1  ;;  %952 = sbr.rel (!%p2510_p6) target bundleno = 765 (0x2fd), region = 52 }
 0x2bf   : > { %943 = vst.msk [vmem:[%s2253_s12 + $0xe8] sm:$0xff] %vm913_vm0, %v910_v42  ;;  %v878_v46 = vadd.f32 %v1475_v45, %v2248_v37  ;;  %v872_v47 = vpop.f32.mrb[47].mxu1 }
 0x2c0   : > { %942 = vst.msk [vmem:[%s2253_s12 + $0xe0] sm:$0xff] %vm913_vm0, %v909_v44  ;;  %v873_v48 = vadd.f32 %v2248_v37, %v872_v47 }
 0x2c1   : > { %v912_v50 = vmax.f32 %v878_v46, 0.0 }
 0x2c2   : > { %v911_v51 = vmax.f32 %v873_v48, 0.0 }
 0x2c3   : > { %945 = vst.msk [vmem:[%s2253_s12 + $0xf8] sm:$0xff] %vm913_vm0, %v912_v50 }
 0x2c4   : > { %944 = vst.msk [vmem:[%s2253_s12 + $0xf0] sm:$0xff] %vm913_vm0, %v911_v51 }
 0x2c5   : > { %s2523_s16 = smov (!%p955_p7, %s954_s16), 32 }
 0x2c6   : > { %s1327_s9 = sshll.u32 %s2523_s16, 7 }
 0x2c7   : > { %p1330_p9 = scmp.eq.s32.totalorder %s1327_s9, 0 }
 0x2c8   : > { %s2362_s29 = sshrl.u32 (!%p1330_p9), %s2523_s16, 5 }
 0x2c9   : > { %963 = sbr.rel (%p1330_p9) target bundleno = 765 (0x2fd), region = 56  ;;  %p1331_p12 = scmp.le.s32.totalorder (!%p1330_p9), %s2362_s29, 0 }
 0x2d0   : > { %1250 = sbr.rel (%p1331_p12) target bundleno = 744 (0x2e8), region = 138  ;;  %s2511_s22 = smov (!%p1331_p12), %s2356_s6 }
 0x2d1   : > { %s2512_s10 = smov (!%p1331_p12), %s2253_s12  ;;  %s2371_s11 = smov (!%p1331_p12), 0  }
 0x2d2   : > { %s2373_s8 = smov (!%p1331_p12), 0  }
 0x2d7 LB: >> { %v1087_v37 = vld [vmem:[%s1835_s10] sm:$0xff]  ;;  %v1089_v52 = vld [vmem:[%s1835_s10 + $0x8] sm:$0xff]  ;;  %v1091_v53 = vld [vmem:[%s1835_s10 + $0x10] sm:$0xff]  ;;  %s1151_s7 = sadd.s32 1, %s1839_s11  ;;  %s1081_s8 = sadd.s32 1, %s1843_s8   ;;  %s1843_s8 = sphi %s2373_s8, %s1081_s8   ;;  %s1839_s11 = sphi %s2371_s11, %s2515_s11   ;;  %s1835_s10 = sphi %s2512_s10, %s2514_s10   ;;  %s1831_s22 = sphi %s2511_s22, %s2513_s22  }
 0x2d8   : >> { %1088 = vst [vmem:[%s1831_s22] sm:$0xff] %v1087_v37  ;;  %1090 = vst [vmem:[%s1831_s22 + $0x8] sm:$0xff] %v1089_v52  ;;  %v1093_v54 = vld [vmem:[%s1835_s10 + $0x18] sm:$0xff]  ;;  %v1095_v56 = vld [vmem:[%s1835_s10 + $0x20] sm:$0xff]  ;;  %p1152_p0 = scmp.ge.s32.totalorder %s1151_s7, %s2362_s29  ;;  %p1080_p2 = scmp.ge.s32.totalorder %s1081_s8, %s2362_s29 }
 0x2d9   : >> { %1092 = vst [vmem:[%s1831_s22 + $0x10] sm:$0xff] %v1091_v53  ;;  %v1097_v57 = vld [vmem:[%s1835_s10 + $0x28] sm:$0xff]  ;;  %1094 = vst [vmem:[%s1831_s22 + $0x18] sm:$0xff] %v1093_v54  ;;  %v1099_v58 = vld [vmem:[%s1835_s10 + $0x30] sm:$0xff] }
 0x2da   : >> { %1096 = vst [vmem:[%s1831_s22 + $0x20] sm:$0xff] %v1095_v56  ;;  %1098 = vst [vmem:[%s1831_s22 + $0x28] sm:$0xff] %v1097_v57  ;;  %v1101_v59 = vld [vmem:[%s1835_s10 + $0x38] sm:$0xff]  ;;  %v1103_v60 = vld [vmem:[%s1835_s10 + $0x40] sm:$0xff]  ;;  %s2525_s7 = smov (%p1152_p0, %s1151_s7), 0 }
 0x2db   : >> { %1100 = vst [vmem:[%s1831_s22 + $0x30] sm:$0xff] %v1099_v58  ;;  %1102 = vst [vmem:[%s1831_s22 + $0x38] sm:$0xff] %v1101_v59  ;;  %v1105_v61 = vld [vmem:[%s1835_s10 + $0x48] sm:$0xff]  ;;  %v1107_v62 = vld [vmem:[%s1835_s10 + $0x50] sm:$0xff]  ;;  %s1332_s27 = sshll.u32 %s2525_s7, 8  ;;  %s2515_s11 = smov %s2525_s7 }
 0x2dc   : >> { %1104 = vst [vmem:[%s1831_s22 + $0x40] sm:$0xff] %v1103_v60  ;;  %v1109_v63 = vld [vmem:[%s1835_s10 + $0x58] sm:$0xff]  ;;  %1106 = vst [vmem:[%s1831_s22 + $0x48] sm:$0xff] %v1105_v61  ;;  %v1111_v0 = vld [vmem:[%s1835_s10 + $0x60] sm:$0xff]  ;;  %s2429_s14 = scalar_lea.vmem %s2253_s12, %s1332_s27 [#allocation6]   ;;  %s1157_s18 = scalar_lea.vmem %s2356_s6, %s1332_s27  }
 0x2dd   : >> { %1108 = vst [vmem:[%s1831_s22 + $0x50] sm:$0xff] %v1107_v62  ;;  %1110 = vst [vmem:[%s1831_s22 + $0x58] sm:$0xff] %v1109_v63  ;;  %v1113_v1 = vld [vmem:[%s1835_s10 + $0x68] sm:$0xff]  ;;  %v1115_v2 = vld [vmem:[%s1835_s10 + $0x70] sm:$0xff] }
 0x2de   : >> { %1112 = vst [vmem:[%s1831_s22 + $0x60] sm:$0xff] %v1111_v0  ;;  %1114 = vst [vmem:[%s1831_s22 + $0x68] sm:$0xff] %v1113_v1  ;;  %v1117_v3 = vld [vmem:[%s1835_s10 + $0x78] sm:$0xff]  ;;  %v1119_v4 = vld [vmem:[%s1835_s10 + $0x80] sm:$0xff] }
 0x2df   : >> { %1116 = vst [vmem:[%s1831_s22 + $0x70] sm:$0xff] %v1115_v2  ;;  %v1121_v5 = vld [vmem:[%s1835_s10 + $0x88] sm:$0xff]  ;;  %1118 = vst [vmem:[%s1831_s22 + $0x78] sm:$0xff] %v1117_v3  ;;  %v1123_v6 = vld [vmem:[%s1835_s10 + $0x90] sm:$0xff] }
 0x2e0   : >> { %1120 = vst [vmem:[%s1831_s22 + $0x80] sm:$0xff] %v1119_v4  ;;  %1122 = vst [vmem:[%s1831_s22 + $0x88] sm:$0xff] %v1121_v5  ;;  %v1125_v7 = vld [vmem:[%s1835_s10 + $0x98] sm:$0xff]  ;;  %v1127_v8 = vld [vmem:[%s1835_s10 + $0xa0] sm:$0xff] }
 0x2e1   : >> { %1124 = vst [vmem:[%s1831_s22 + $0x90] sm:$0xff] %v1123_v6  ;;  %1126 = vst [vmem:[%s1831_s22 + $0x98] sm:$0xff] %v1125_v7  ;;  %v1129_v13 = vld [vmem:[%s1835_s10 + $0xa8] sm:$0xff]  ;;  %v1131_v10 = vld [vmem:[%s1835_s10 + $0xb0] sm:$0xff]  ;;  %1083 = sbr.rel (!%p1080_p2) target bundleno = 727 (0x2d7), region = 144 }
 0x2e2   : >> { %1128 = vst [vmem:[%s1831_s22 + $0xa0] sm:$0xff] %v1127_v8  ;;  %v1133_v19 = vld [vmem:[%s1835_s10 + $0xb8] sm:$0xff]  ;;  %1130 = vst [vmem:[%s1831_s22 + $0xa8] sm:$0xff] %v1129_v13  ;;  %v1135_v11 = vld [vmem:[%s1835_s10 + $0xc0] sm:$0xff] }
 0x2e3   : >> { %1132 = vst [vmem:[%s1831_s22 + $0xb0] sm:$0xff] %v1131_v10  ;;  %1134 = vst [vmem:[%s1831_s22 + $0xb8] sm:$0xff] %v1133_v19  ;;  %v1137_v25 = vld [vmem:[%s1835_s10 + $0xc8] sm:$0xff]  ;;  %v1139_v12 = vld [vmem:[%s1835_s10 + $0xd0] sm:$0xff] }
 0x2e4   : >> { %1136 = vst [vmem:[%s1831_s22 + $0xc0] sm:$0xff] %v1135_v11  ;;  %1138 = vst [vmem:[%s1831_s22 + $0xc8] sm:$0xff] %v1137_v25  ;;  %v1141_v14 = vld [vmem:[%s1835_s10 + $0xd8] sm:$0xff]  ;;  %v1143_v31 = vld [vmem:[%s1835_s10 + $0xe0] sm:$0xff] }
 0x2e5   : >> { %1140 = vst [vmem:[%s1831_s22 + $0xd0] sm:$0xff] %v1139_v12  ;;  %v1145_v15 = vld [vmem:[%s1835_s10 + $0xe8] sm:$0xff]  ;;  %1142 = vst [vmem:[%s1831_s22 + $0xd8] sm:$0xff] %v1141_v14  ;;  %v1147_v16 = vld [vmem:[%s1835_s10 + $0xf0] sm:$0xff] }
 0x2e6   : >> { %1144 = vst [vmem:[%s1831_s22 + $0xe0] sm:$0xff] %v1143_v31  ;;  %1146 = vst [vmem:[%s1831_s22 + $0xe8] sm:$0xff] %v1145_v15  ;;  %v1149_v49 = vld [vmem:[%s1835_s10 + $0xf8] sm:$0xff]  ;;  %s2514_s10 = smov %s2429_s14 }
 0x2e7   : >> { %1148 = vst [vmem:[%s1831_s22 + $0xf0] sm:$0xff] %v1147_v16  ;;  %1150 = vst [vmem:[%s1831_s22 + $0xf8] sm:$0xff] %v1149_v49  ;;  %s2513_s22 = smov %s1157_s18 }
 0x2e8 PF: > { %s2470_s24 = sand.u32 31, %s2523_s16   ;;  %s1346_s25 = sshll.u32 %s2362_s29, 8 }
 0x2e9   : > { %s1162_s28 = scalar_lea.vmem %s2253_s12, %s1346_s25 [#allocation6]   ;;  %s1164_s30 = scalar_lea.vmem %s2356_s6, %s1346_s25  }
 0x2ea   : > { %p1337_p4 = scmp.le.s32.totalorder %s2470_s24, 0 }
 0x2eb   : > { %s1845_s15 = smov (!%p1337_p4), %s1164_s30   ;;  %s1849_s13 = smov (!%p1337_p4), %s1162_s28  }
 0x2ec   : > { %1264 = sbr.rel (%p1337_p4) target bundleno = 765 (0x2fd), region = 149  ;;  %s1853_s17 = smov (!%p1337_p4), 0  }
 0x2ed   : > { %s1857_s21 = smov (!%p1337_p4), 0  }
 0x2f3 LB: >> { %v1174_v43 = vld [vmem:[%s1851_s13] sm:$0xff]  ;;  %s1176_s16 = sadd.s32 1, %s1855_s17  ;;  %s1168_s21 = sadd.s32 1, %s1859_s21   ;;  %s1859_s21 = sphi %s1857_s21, %s1168_s21   ;;  %s1855_s17 = sphi %s1853_s17, %s1854_s17   ;;  %s1851_s13 = sphi %s1849_s13, %s1181_s13   ;;  %s1847_s15 = sphi %s1845_s15, %s1182_s15  }
 0x2f4   : >> { %1175 = vst [vmem:[%s1847_s15] sm:$0xff] %v1174_v43  ;;  %p1177_p8 = scmp.ge.s32.totalorder %s1176_s16, %s2470_s24  ;;  %p1167_p10 = scmp.ge.s32.totalorder %s1168_s21, %s2470_s24 }
 0x2f6   : >> { %s2527_s16 = smov (%p1177_p8, %s1176_s16), 0  ;;  %1170 = sbr.rel (!%p1167_p10) target bundleno = 755 (0x2f3), region = 155 }
 0x2f7   : >> { %s1338_s12 = sshll.u32 %s2527_s16, 3  ;;  %s1854_s17 = smov %s2527_s16  }
 0x2f8   : >> { %s1181_s13 = scalar_lea.vmem %s1162_s28, %s1338_s12 [#allocation6]   ;;  %s1182_s15 = scalar_lea.vmem %s1164_s30, %s1338_s12  }
 0x2fd PF: > { %p16_p13 = scmp.ge.s32.totalorder %s1920_s23, 4   ;;  %s2516_s18 = smov %s1819_s19 }
 0x2fe   : > { %s2517_s19 = smov %s1823_s20  ;;  %s2518_s20 = smov %s1930_s26 }
 0x2ff   : > { %s2519_s21 = smov %s1920_s23  ;;  %18 = sbr.rel (!%p16_p13) target bundleno = 4 (0x4), region = 166 }
 0x306   :  { %1198 = vsyncpa [#allocation3], 1 }
 0x307   :  { %1200 = vsyncpa [#allocation3 + $0x1], 1 }
 0x308   :  { %1201 = vsyncpa [#allocation5], 1 }

</bundles_post_ra>
